<compile_context>
chip_gen: v6e
topology: v6e:2x2x1
jax: 0.10.0
libtpu: 0.0.40
codegen_flags: <defaults>
</compile_context>

<pallas_src>
import functools
import math

import jax
import jax.numpy as jnp
from jax.experimental import pallas as pl
from jax.experimental.pallas import tpu as pltpu

LN_EPS = 1e-5
NEG_INF = -1e30          # finite sentinel (safe with online softmax; ki=0 always has unmasked cols)
_GELU_K = math.sqrt(2.0 / math.pi)


def _layer_norm(x, w, b):
    mu = jnp.mean(x, axis=-1, keepdims=True)
    var = jnp.mean((x - mu) ** 2, axis=-1, keepdims=True)
    return (x - mu) * jax.lax.rsqrt(var + LN_EPS) * w + b


def _new_gelu(x):
    return 0.5 * x * (1.0 + jnp.tanh(_GELU_K * (x + 0.044715 * x ** 3)))


def _last_active_kv_block(qi, tq, tk):
    """Last causally-visible kv block index for query tile qi (shared by guard + index_map)."""
    return (qi * tq + tq - 1) // tk


def _rotate_half_full(t, first_half, half, C, use_xlu_roll):
    """rotate_half applied lane-dense on [rows, C]; heads are contiguous Dh blocks."""
    if use_xlu_roll:
        fwd = pltpu.roll(t, shift=half, axis=-1)    # fwd[c] = t[c - half]
        bwd = pltpu.roll(t, shift=-half, axis=-1)   # bwd[c] = t[c + half]
    else:
        fwd = jnp.concatenate([t[:, C - half:], t[:, :C - half]], axis=1)
        bwd = jnp.concatenate([t[:, half:], t[:, :half]], axis=1)
    return jnp.where(first_half, -bwd, fwd)


# ---------------- kernel 1: LN1 + QKV projection + RoPE ----------------
def qkv_rope_kernel(x_ref, ln1w_ref, ln1b_ref, wqkv_ref, bqkv_ref,
                    cos_ref, sin_ref, q_ref, k_ref, v_ref,
                    *, C, H, Dh, scale, use_xlu_roll):
    x = x_ref[0].astype(jnp.float32)                       # [TT, C]
    xn = _layer_norm(x, ln1w_ref[0], ln1b_ref[0])
    qkv = jnp.dot(xn.astype(jnp.bfloat16), wqkv_ref[...],
                  preferred_element_type=jnp.float32) + bqkv_ref[0]   # [TT, 3C] f32
    q = qkv[:, :C]
    k = qkv[:, C:2 * C]
    v = qkv[:, 2 * C:]

    # cos/sin arrive as [TT, Dh] blocks; broadcast across heads in VMEM
    # (removes the old [T, C] f32 per-grid-step HBM DMA).
    cos = jnp.tile(cos_ref[...], (1, H))                   # [TT, C]
    sin = jnp.tile(sin_ref[...], (1, H))

    half = Dh // 2
    rows = x.shape[0]
    col = jax.lax.broadcasted_iota(jnp.int32, (rows, C), 1)
    first_half = (col % Dh) < half

    q = (q * cos + _rotate_half_full(q, first_half, half, C, use_xlu_roll) * sin) * scale
    k = k * cos + _rotate_half_full(k, first_half, half, C, use_xlu_roll) * sin

    # Lane-slice writes into head-major [H, T, Dh] layout (bf16).
    # TODO(synk): for Dh=64 a head-pair packed [H/2, T, 2*Dh] layout would make
    # these stores and the MXU contraction full-width.
    for h in range(H):
        sl = slice(h * Dh, (h + 1) * Dh)
        q_ref[0, h] = q[:, sl].astype(q_ref.dtype)
        k_ref[0, h] = k[:, sl].astype(k_ref.dtype)
        v_ref[0, h] = v[:, sl].astype(v_ref.dtype)


# ---------------- kernel 2: flash causal attention (online softmax) ----------------
def flash_attn_kernel(q_ref, k_ref, v_ref, y_ref, m_scr, l_scr, acc_scr, *, TQ, TK):
    qi = pl.program_id(1)
    ki = pl.program_id(2)
    nk = pl.num_programs(2)
    q_start = qi * TQ
    kv_start = ki * TK

    @pl.when(ki == 0)
    def _():
        m_scr[...] = jnp.full_like(m_scr, NEG_INF)
        l_scr[...] = jnp.zeros_like(l_scr)
        acc_scr[...] = jnp.zeros_like(acc_scr)

    is_active = ki <= _last_active_kv_block(qi, TQ, TK)    # matches kv_map clamp
    on_diagonal = kv_start + TK - 1 > q_start              # tile straddles the causal diagonal

    @pl.when(is_active)
    def _():
        q3 = q_ref[0]                                      # [H, TQ, Dh] bf16 (pre-scaled)
        k3 = k_ref[0]                                      # [H, TK, Dh] bf16
        v3 = v_ref[0]                                      # [H, TK, Dh] bf16
        s = jnp.einsum("hqd,hkd->hqk", q3, k3,
                       preferred_element_type=jnp.float32)  # [H, TQ, TK] f32

        def online_update(scores):
            m_prev = m_scr[...]
            m_new = jnp.maximum(m_prev, jnp.max(scores, axis=-1, keepdims=True))
            alpha = jnp.exp(m_prev - m_new)
            p = jnp.exp(scores - m_new)
            l_scr[...] = alpha * l_scr[...] + jnp.sum(p, axis=-1, keepdims=True)
            acc_scr[...] = alpha * acc_scr[...] + jnp.einsum(
                "hqk,hkd->hqd", p.astype(v3.dtype), v3,
                preferred_element_type=jnp.float32)
            m_scr[...] = m_new

        # Only diagonal tiles pay for the iota/compare/select; interior tiles skip it.
        @pl.when(on_diagonal)
        def _():
            rows_ = jax.lax.broadcasted_iota(jnp.int32, (TQ, TK), 0) + q_start
            cols_ = jax.lax.broadcasted_iota(jnp.int32, (TQ, TK), 1) + kv_start
            online_update(jnp.where((rows_ >= cols_)[None], s, NEG_INF))

        @pl.when(jnp.logical_not(on_diagonal))
        def _():
            online_update(s)

    @pl.when(ki == nk - 1)
    def _():
        inv_l = pl.reciprocal(l_scr[...], approx=True)     # forward-only: ~1e-3 rel err OK
        y_ref[0] = (acc_scr[...] * inv_l).astype(y_ref.dtype)


# ------- kernel 3: out-proj + residual + LN2 + MLP (hidden-tiled) + residual -------
def proj_mlp_kernel(x_ref, y_ref, wproj_ref, bproj_ref, ln2w_ref, ln2b_ref,
                    wfc_ref, bfc_ref, wfp_ref, bfp_ref, o_ref,
                    x1_scr, xn2_scr, acc_scr, *, H):
    ji = pl.program_id(2)
    nj = pl.num_programs(2)

    @pl.when(ji == 0)
    def _():
        # Out-projection via per-head partial matmuls (no head-concat staging scratch).
        x1 = x_ref[0].astype(jnp.float32) + bproj_ref[0]
        for h in range(H):
            x1 = x1 + jnp.dot(y_ref[0, h], wproj_ref[h],
                              preferred_element_type=jnp.float32)
        x1_scr[...] = x1                                   # residual 1
        xn2_scr[...] = _layer_norm(x1, ln2w_ref[0], ln2b_ref[0]).astype(jnp.bfloat16)
        acc_scr[...] = jnp.zeros_like(acc_scr)

    # MLP tiled over the 4C hidden dimension (reduction axis = last grid axis).
    h1 = jnp.dot(xn2_scr[...], wfc_ref[...],
                 preferred_element_type=jnp.float32) + bfc_ref[0]
    g = _new_gelu(h1)
    acc_scr[...] += jnp.dot(g.astype(jnp.bfloat16), wfp_ref[...],
                            preferred_element_type=jnp.float32)

    @pl.when(ji == nj - 1)
    def _():
        o_ref[0] = (x1_scr[...] + acc_scr[...] + bfp_ref[0]).astype(o_ref.dtype)  # residual 2


def _pick_tile(n, target):
    """Largest 128-aligned (else 8-aligned) divisor of n that is <= target; n if n <= target."""
    if n <= target:
        return n
    for align in (128, 8):
        cand = (min(target, n) // align) * align
        while cand >= align:
            if n % cand == 0:
                return cand
            cand -= align
    return n


def _tpu_vmem_capacity_bytes():
    try:
        return int(pltpu.get_tpu_info().vmem_capacity_bytes)
    except Exception:
        return 64 * 1024 * 1024      # conservative (v7x-sized) fallback


def block_forward(x, params, cos, sin, nhead, *,
                  q_tile=256, kv_tile=512, mlp_hidden_tile=2048):
    B, T, C = x.shape
    H = nhead
    Dh = C // H
    f32, bf16 = jnp.float32, jnp.bfloat16

    # Generation-aware VMEM budget / kv tile.
    vmem_cap = _tpu_vmem_capacity_bytes()
    vmem_limit = min(100 * 1024 * 1024, (vmem_cap * 3) // 4)   # ~96 MiB on 128 MiB parts, 48 MiB on v7x
    if vmem_cap <= 64 * 1024 * 1024:
        kv_tile = min(kv_tile, 256)    # bound the [H, TQ, TK] score slab on v7x

    TQ = _pick_tile(T, q_tile)
    TK = _pick_tile(T, kv_tile)
    NT = T // TQ
    NK = T // TK

    H4 = 4 * C
    TH = _pick_tile(H4, mlp_hidden_tile)
    if TH != H4 and TH % 128 != 0:     # wfc block's last dim must be 128-aligned or full
        TH = H4
    NJ = H4 // TH

    # ---- weight prep (glue, not hot path): y = x@W + b layout, bf16 matmul operands ----
    ln1w = params["ln1_w"].astype(f32).reshape(1, C)
    ln1b = params["ln1_b"].astype(f32).reshape(1, C)
    wqkv = params["attn_w"].T.astype(bf16)                     # [C, 3C]
    bqkv = params["attn_b"].astype(f32).reshape(1, 3 * C)
    wproj3 = params["proj_w"].T.astype(bf16).reshape(H, Dh, C)  # per-head out-proj slabs
    bproj = params["proj_b"].astype(f32).reshape(1, C)
    ln2w = params["ln2_w"].astype(f32).reshape(1, C)
    ln2b = params["ln2_b"].astype(f32).reshape(1, C)
    wfc = params["fc_w"].T.astype(bf16)                         # [C, 4C]
    bfc = params["fc_b"].astype(f32).reshape(1, 4 * C)
    wfp = params["fcproj_w"].T.astype(bf16)                     # [4C, C]
    bfp = params["fcproj_b"].astype(f32).reshape(1, C)

    cos_f = cos.astype(f32)    # [T, Dh] (broadcast across heads inside kernel 1)
    sin_f = sin.astype(f32)

    def const_spec(shape):
        nd = len(shape)
        return pl.BlockSpec(shape, lambda *args, _nd=nd: (0,) * _nd)

    # ---------------- kernel 1 ----------------
    # TODO(synk): for very large C, tile the 3C output dim of wqkv with an extra grid axis.
    kernel1 = functools.partial(
        qkv_rope_kernel, C=C, H=H, Dh=Dh, scale=1.0 / math.sqrt(Dh),
        use_xlu_roll=(C % 128 == 0))
    qkv_shape = jax.ShapeDtypeStruct((B, H, T, Dh), bf16)
    qkv_spec = pl.BlockSpec((1, H, TQ, Dh), lambda b, t: (b, 0, t, 0))
    q, k, v = pl.pallas_call(
        kernel1,
        out_shape=(qkv_shape, qkv_shape, qkv_shape),
        grid=(B, NT),
        in_specs=[
            pl.BlockSpec((1, TQ, C), lambda b, t: (b, t, 0)),       # x tile
            const_spec((1, C)), const_spec((1, C)),                 # ln1 w/b
            const_spec((C, 3 * C)), const_spec((1, 3 * C)),         # Wqkv / bqkv
            pl.BlockSpec((TQ, Dh), lambda b, t: (t, 0)),            # cos [T, Dh]
            pl.BlockSpec((TQ, Dh), lambda b, t: (t, 0)),            # sin [T, Dh]
        ],
        out_specs=(qkv_spec, qkv_spec, qkv_spec),
        compiler_params=pltpu.CompilerParams(
            dimension_semantics=("parallel", "parallel"),
            vmem_limit_bytes=vmem_limit),
    )(x, ln1w, ln1b, wqkv, bqkv, cos_f, sin_f)

    # ---------------- kernel 2 ----------------
    def kv_map(b, qi, ki):
        # Clamp to the causal frontier: skipped tiles re-use the resident block (no DMA).
        ki_c = jnp.minimum(ki, _last_active_kv_block(qi, TQ, TK))
        return (b, 0, ki_c, 0)

    kernel2 = functools.partial(flash_attn_kernel, TQ=TQ, TK=TK)
    y_attn = pl.pallas_call(
        kernel2,
        out_shape=jax.ShapeDtypeStruct((B, H, T, Dh), bf16),
        grid=(B, NT, NK),
        in_specs=[
            pl.BlockSpec((1, H, TQ, Dh), lambda b, qi, ki: (b, 0, qi, 0)),  # q
            pl.BlockSpec((1, H, TK, Dh), kv_map),                           # k
            pl.BlockSpec((1, H, TK, Dh), kv_map),                           # v
        ],
        out_specs=pl.BlockSpec((1, H, TQ, Dh), lambda b, qi, ki: (b, 0, qi, 0)),
        scratch_shapes=[
            pltpu.VMEM((H, TQ, 1), jnp.float32),    # running max m
            pltpu.VMEM((H, TQ, 1), jnp.float32),    # running denom l
            pltpu.VMEM((H, TQ, Dh), jnp.float32),   # acc (P @ V)
        ],
        compiler_params=pltpu.CompilerParams(
            dimension_semantics=("parallel", "parallel", "arbitrary"),
            vmem_limit_bytes=vmem_limit),
    )(q, k, v)

    # ---------------- kernel 3 ----------------
    kernel3 = functools.partial(proj_mlp_kernel, H=H)
    out = pl.pallas_call(
        kernel3,
        out_shape=jax.ShapeDtypeStruct((B, T, C), x.dtype),
        grid=(B, NT, NJ),
        in_specs=[
            pl.BlockSpec((1, TQ, C), lambda b, t, j: (b, t, 0)),            # x (residual)
            pl.BlockSpec((1, H, TQ, Dh), lambda b, t, j: (b, 0, t, 0)),     # attention out
            const_spec((H, Dh, C)), const_spec((1, C)),                     # Wproj / bproj
            const_spec((1, C)), const_spec((1, C)),                         # ln2 w/b
            pl.BlockSpec((C, TH), lambda b, t, j: (0, j)),                  # Wfc tile
            pl.BlockSpec((1, TH), lambda b, t, j: (0, j)),                  # bfc tile
            pl.BlockSpec((TH, C), lambda b, t, j: (j, 0)),                  # Wfp tile
            const_spec((1, C)),                                             # bfp
        ],
        out_specs=pl.BlockSpec((1, TQ, C), lambda b, t, j: (b, t, 0)),
        scratch_shapes=[
            pltpu.VMEM((TQ, C), jnp.float32),    # x1 (post-attention residual)
            pltpu.VMEM((TQ, C), jnp.bfloat16),   # LN2 output (MLP input)
            pltpu.VMEM((TQ, C), jnp.float32),    # MLP accumulator
        ],
        compiler_params=pltpu.CompilerParams(
            dimension_semantics=("parallel", "parallel", "arbitrary"),
            vmem_limit_bytes=vmem_limit),
    )(x, y_attn, wproj3, bproj, ln2w, ln2b, wfc, bfc, wfp, bfp)
    return out


# ---------------- plain-JAX reference (for correctness check) ----------------
def ref_block(x, params, cos, sin, nhead):
    B, T, C = x.shape
    H = nhead
    Dh = C // H

    def ln(v, w, b):
        mu = jnp.mean(v, axis=-1, keepdims=True)
        var = jnp.mean((v - mu) ** 2, axis=-1, keepdims=True)
        return (v - mu) / jnp.sqrt(var + LN_EPS) * w + b

    def rot_half(t):
        t1 = t[..., : t.shape[-1] // 2]
        t2 = t[..., t.shape[-1] // 2:]
        return jnp.concatenate([-t2, t1], axis=-1)

    xn = ln(x, params["ln1_w"], params["ln1_b"])
    qkv = xn @ params["attn_w"].T + params["attn_b"]
    q, k, v = jnp.split(qkv, 3, axis=-1)
    q = q.reshape(B, T, H, Dh).transpose(0, 2, 1, 3)
    k = k.reshape(B, T, H, Dh).transpose(0, 2, 1, 3)
    v = v.reshape(B, T, H, Dh).transpose(0, 2, 1, 3)
    c = cos[None, None]
    s = sin[None, None]
    q = q * c + rot_half(q) * s
    k = k * c + rot_half(k) * s
    scores = jnp.einsum("bhtd,bhsd->bhts", q, k) / math.sqrt(Dh)
    causal = jnp.tril(jnp.ones((T, T), bool))
    scores = jnp.where(causal[None, None], scores, -jnp.inf)
    p = jax.nn.softmax(scores, axis=-1)
    y = jnp.einsum("bhts,bhsd->bhtd", p, v).transpose(0, 2, 1, 3).reshape(B, T, C)
    y = y @ params["proj_w"].T + params["proj_b"]
    x = x + y
    xn = ln(x, params["ln2_w"], params["ln2_b"])
    h = xn @ params["fc_w"].T + params["fc_b"]
    g = 0.5 * h * (1.0 + jnp.tanh(math.sqrt(2.0 / math.pi) * (h + 0.044715 * h ** 3)))
    out = g @ params["fcproj_w"].T + params["fcproj_b"]
    return x + out


if __name__ == "__main__":
    # Small deterministic config; T=16 with 8-row tiles exercises the multi-tile
    # flash path (init / interior fast path / diagonal masked path / skip /
    # finalize) and 4C=256 with a 128-wide hidden tile exercises the MLP
    # hidden-dim accumulation loop.
    B, T, d_model, nhead = 2, 16, 64, 4
    Dh = d_model // nhead

    key = jax.random.PRNGKey(0)
    ks = jax.random.split(key, 10)
    scale = 0.02
    params = {
        "ln1_w": jnp.ones((d_model,), jnp.float32),
        "ln1_b": jnp.zeros((d_model,), jnp.float32),
        "attn_w": scale * jax.random.normal(ks[0], (3 * d_model, d_model), jnp.float32),
        "attn_b": scale * jax.random.normal(ks[1], (3 * d_model,), jnp.float32),
        "proj_w": scale * jax.random.normal(ks[2], (d_model, d_model), jnp.float32),
        "proj_b": scale * jax.random.normal(ks[3], (d_model,), jnp.float32),
        "ln2_w": jnp.ones((d_model,), jnp.float32),
        "ln2_b": jnp.zeros((d_model,), jnp.float32),
        "fc_w": scale * jax.random.normal(ks[4], (4 * d_model, d_model), jnp.float32),
        "fc_b": scale * jax.random.normal(ks[5], (4 * d_model,), jnp.float32),
        "fcproj_w": scale * jax.random.normal(ks[6], (d_model, 4 * d_model), jnp.float32),
        "fcproj_b": scale * jax.random.normal(ks[7], (d_model,), jnp.float32),
    }

    # RoPE cache (LlamaRotaryEmbedding), sliced to seq_len=T, position_ids=arange(T)
    inv_freq = 1.0 / (10000.0 ** (jnp.arange(0, Dh, 2, dtype=jnp.float32) / Dh))
    t = jnp.arange(T, dtype=jnp.float32)
    freqs = jnp.einsum("i,j->ij", t, inv_freq)
    emb = jnp.concatenate([freqs, freqs], axis=-1)      # [T, Dh]
    cos = jnp.cos(emb)
    sin = jnp.sin(emb)

    x = jax.random.normal(ks[8], (B, T, d_model), jnp.float32)

    out = block_forward(x, params, cos, sin, nhead,
                        q_tile=8, kv_tile=8, mlp_hidden_tile=128)
    out = jax.block_until_ready(out)

    ref = ref_block(x, params, cos, sin, nhead)
    assert out.shape == (B, T, d_model)
    # bf16 matmul operands (f32 accumulation) + approx reciprocal -> loosened tolerance.
    assert jnp.allclose(out, ref, atol=2e-2, rtol=2e-2), (
        float(jnp.max(jnp.abs(out - ref))))

    print("KERNEL_OK")
</pallas_src>

<mosaic_0001>
module attributes {stable_mosaic.version = 11 : i64} {
  func.func @qkv_rope_kernel(%arg0: i32, %arg1: i32, %arg2: memref<1x8x64xf32, #tpu.memory_space<vmem>>, %arg3: memref<1x64xf32, #tpu.memory_space<vmem>>, %arg4: memref<1x64xf32, #tpu.memory_space<vmem>>, %arg5: memref<64x192xbf16, #tpu.memory_space<vmem>>, %arg6: memref<1x192xf32, #tpu.memory_space<vmem>>, %arg7: memref<8x16xf32, #tpu.memory_space<vmem>>, %arg8: memref<8x16xf32, #tpu.memory_space<vmem>>, %arg9: memref<1x4x8x16xbf16, #tpu.memory_space<vmem>>, %arg10: memref<1x4x8x16xbf16, #tpu.memory_space<vmem>>, %arg11: memref<1x4x8x16xbf16, #tpu.memory_space<vmem>>) attributes {dimension_semantics = [#tpu.dimension_semantics<parallel>, #tpu.dimension_semantics<parallel>], iteration_bounds = array<i64: 2, 2>, scalar_prefetch = 0 : i64, scratch_operands = 0 : i64, tpu.core_type = #tpu.core_type<tc>, window_params = [{transform_indices = @transform_0, window_bounds = array<i64: 1, 8, 64>}, {pipeline_mode = #tpu.pipeline_mode<synchronous>, transform_indices = @transform_1, window_bounds = array<i64: 1, 64>}, {pipeline_mode = #tpu.pipeline_mode<synchronous>, transform_indices = @transform_2, window_bounds = array<i64: 1, 64>}, {pipeline_mode = #tpu.pipeline_mode<synchronous>, transform_indices = @transform_3, window_bounds = array<i64: 64, 192>}, {pipeline_mode = #tpu.pipeline_mode<synchronous>, transform_indices = @transform_4, window_bounds = array<i64: 1, 192>}, {transform_indices = @transform_5, window_bounds = array<i64: 8, 16>}, {transform_indices = @transform_6, window_bounds = array<i64: 8, 16>}, {transform_indices = @transform_7, window_bounds = array<i64: 1, 4, 8, 16>}, {transform_indices = @transform_8, window_bounds = array<i64: 1, 4, 8, 16>}, {transform_indices = @transform_9, window_bounds = array<i64: 1, 4, 8, 16>}]} {
    %c0 = arith.constant 0 : index
    %c0_0 = arith.constant 0 : index
    %c0_1 = arith.constant 0 : index
    %0 = vector.load %arg2[%c0, %c0_0, %c0_1] : memref<1x8x64xf32, #tpu.memory_space<vmem>>, vector<1x8x64xf32>
    %1 = vector.shape_cast %0 : vector<1x8x64xf32> to vector<8x64xf32>
    %c0_2 = arith.constant 0 : index
    %c0_3 = arith.constant 0 : index
    %2 = vector.load %arg3[%c0_2, %c0_3] : memref<1x64xf32, #tpu.memory_space<vmem>>, vector<1x64xf32>
    %3 = vector.shape_cast %2 : vector<1x64xf32> to vector<64xf32>
    %c0_4 = arith.constant 0 : index
    %c0_5 = arith.constant 0 : index
    %4 = vector.load %arg4[%c0_4, %c0_5] : memref<1x64xf32, #tpu.memory_space<vmem>>, vector<1x64xf32>
    %5 = vector.shape_cast %4 : vector<1x64xf32> to vector<64xf32>
    %cst = arith.constant dense<0.000000e+00> : vector<8xf32>
    %6 = vector.multi_reduction <add>, %1, %cst [1] : vector<8x64xf32> to vector<8xf32>
    %7 = vector.shape_cast %6 : vector<8xf32> to vector<8x1xf32>
    %cst_6 = arith.constant 6.400000e+01 : f32
    %8 = vector.broadcast %cst_6 : f32 to vector<8x1xf32>
    %9 = arith.divf %7, %8 : vector<8x1xf32>
    %10 = vector.broadcast %9 : vector<8x1xf32> to vector<8x64xf32>
    %11 = arith.subf %1, %10 : vector<8x64xf32>
    %12 = arith.mulf %11, %11 : vector<8x64xf32>
    %cst_7 = arith.constant dense<0.000000e+00> : vector<8xf32>
    %13 = vector.multi_reduction <add>, %12, %cst_7 [1] : vector<8x64xf32> to vector<8xf32>
    %14 = vector.shape_cast %13 : vector<8xf32> to vector<8x1xf32>
    %cst_8 = arith.constant 6.400000e+01 : f32
    %15 = vector.broadcast %cst_8 : f32 to vector<8x1xf32>
    %16 = arith.divf %14, %15 : vector<8x1xf32>
    %17 = vector.broadcast %9 : vector<8x1xf32> to vector<8x64xf32>
    %18 = arith.subf %1, %17 : vector<8x64xf32>
    %cst_9 = arith.constant 9.99999974E-6 : f32
    %19 = vector.broadcast %cst_9 : f32 to vector<8x1xf32>
    %20 = arith.addf %16, %19 : vector<8x1xf32>
    %21 = math.rsqrt %20 : vector<8x1xf32>
    %22 = vector.broadcast %21 : vector<8x1xf32> to vector<8x64xf32>
    %23 = arith.mulf %18, %22 : vector<8x64xf32>
    %24 = vector.shape_cast %3 : vector<64xf32> to vector<1x64xf32>
    %25 = vector.broadcast %24 : vector<1x64xf32> to vector<8x64xf32>
    %26 = arith.mulf %23, %25 : vector<8x64xf32>
    %27 = vector.shape_cast %5 : vector<64xf32> to vector<1x64xf32>
    %28 = vector.broadcast %27 : vector<1x64xf32> to vector<8x64xf32>
    %29 = arith.addf %26, %28 : vector<8x64xf32>
    %30 = arith.truncf %29 : vector<8x64xf32> to vector<8x64xbf16>
    %c0_10 = arith.constant 0 : index
    %c0_11 = arith.constant 0 : index
    %31 = vector.load %arg5[%c0_10, %c0_11] : memref<64x192xbf16, #tpu.memory_space<vmem>>, vector<64x192xbf16>
    %cst_12 = arith.constant dense<0.000000e+00> : vector<8x192xf32>
    %32 = tpu.matmul %30, %31, %cst_12 {dimension_numbers = #tpu.dot_dimension_numbers<[1], [0], [0], [1], [0, 0, 1, 1], [], []>} : vector<8x64xbf16>, vector<64x192xbf16>, vector<8x192xf32> -> vector<8x192xf32>
    %c0_13 = arith.constant 0 : index
    %c0_14 = arith.constant 0 : index
    %33 = vector.load %arg6[%c0_13, %c0_14] : memref<1x192xf32, #tpu.memory_space<vmem>>, vector<1x192xf32>
    %34 = vector.shape_cast %33 : vector<1x192xf32> to vector<192xf32>
    %35 = vector.shape_cast %34 : vector<192xf32> to vector<1x192xf32>
    %36 = vector.broadcast %35 : vector<1x192xf32> to vector<8x192xf32>
    %37 = arith.addf %32, %36 : vector<8x192xf32>
    %38 = vector.extract_strided_slice %37 {offsets = [0, 0], sizes = [8, 64], strides = [1, 1]} : vector<8x192xf32> to vector<8x64xf32>
    %39 = vector.extract_strided_slice %37 {offsets = [0, 64], sizes = [8, 64], strides = [1, 1]} : vector<8x192xf32> to vector<8x64xf32>
    %40 = vector.extract_strided_slice %37 {offsets = [0, 128], sizes = [8, 64], strides = [1, 1]} : vector<8x192xf32> to vector<8x64xf32>
    %c0_15 = arith.constant 0 : index
    %c0_16 = arith.constant 0 : index
    %41 = vector.load %arg7[%c0_15, %c0_16] : memref<8x16xf32, #tpu.memory_space<vmem>>, vector<8x16xf32>
    %42 = tpu.concatenate %41, %41, %41, %41 in 1 : vector<8x16xf32>, vector<8x16xf32>, vector<8x16xf32>, vector<8x16xf32> -> vector<8x64xf32>
    %c0_17 = arith.constant 0 : index
    %c0_18 = arith.constant 0 : index
    %43 = vector.load %arg8[%c0_17, %c0_18] : memref<8x16xf32, #tpu.memory_space<vmem>>, vector<8x16xf32>
    %44 = tpu.concatenate %43, %43, %43, %43 in 1 : vector<8x16xf32>, vector<8x16xf32>, vector<8x16xf32>, vector<8x16xf32> -> vector<8x64xf32>
    %45 = tpu.iota {dimensions = array<i32: 1>} : vector<8x64xi32>
    %c16_i32 = arith.constant 16 : i32
    %c0_i32 = arith.constant 0 : i32
    %46 = arith.cmpi eq, %c16_i32, %c0_i32 : i32
    %c1_i32 = arith.constant 1 : i32
    %47 = arith.select %46, %c1_i32, %c16_i32 : i32
    %48 = vector.broadcast %47 : i32 to vector<8x64xi32>
    %49 = arith.remsi %45, %48 : vector<8x64xi32>
    %c0_i32_19 = arith.constant 0 : i32
    %50 = vector.broadcast %c0_i32_19 : i32 to vector<8x64xi32>
    %51 = arith.cmpi ne, %49, %50 : vector<8x64xi32>
    %c0_i32_20 = arith.constant 0 : i32
    %52 = vector.broadcast %c0_i32_20 : i32 to vector<8x64xi32>
    %53 = arith.cmpi slt, %49, %52 : vector<8x64xi32>
    %c0_i32_21 = arith.constant 0 : i32
    %54 = arith.cmpi slt, %47, %c0_i32_21 : i32
    %55 = vector.broadcast %54 : i1 to vector<8x64xi1>
    %56 = vector.broadcast %55 : vector<8x64xi1> to vector<8x64xi1>
    %57 = arith.xori %53, %56 : vector<8x64xi1>
    %58 = arith.andi %57, %51 : vector<8x64xi1>
    %59 = vector.broadcast %47 : i32 to vector<8x64xi32>
    %60 = arith.addi %49, %59 : vector<8x64xi32>
    %61 = arith.select %58, %60, %49 : vector<8x64xi1>, vector<8x64xi32>
    %c8_i32 = arith.constant 8 : i32
    %62 = vector.broadcast %c8_i32 : i32 to vector<8x64xi32>
    %63 = arith.cmpi slt, %61, %62 : vector<8x64xi32>
    %64 = arith.mulf %38, %42 : vector<8x64xf32>
    %65 = vector.extract_strided_slice %38 {offsets = [0, 56], sizes = [8, 8], strides = [1, 1]} : vector<8x64xf32> to vector<8x8xf32>
    %66 = vector.extract_strided_slice %38 {offsets = [0, 0], sizes = [8, 56], strides = [1, 1]} : vector<8x64xf32> to vector<8x56xf32>
    %67 = tpu.concatenate %65, %66 in 1 : vector<8x8xf32>, vector<8x56xf32> -> vector<8x64xf32>
    %68 = vector.extract_strided_slice %38 {offsets = [0, 8], sizes = [8, 56], strides = [1, 1]} : vector<8x64xf32> to vector<8x56xf32>
    %69 = vector.extract_strided_slice %38 {offsets = [0, 0], sizes = [8, 8], strides = [1, 1]} : vector<8x64xf32> to vector<8x8xf32>
    %70 = tpu.concatenate %68, %69 in 1 : vector<8x56xf32>, vector<8x8xf32> -> vector<8x64xf32>
    %cst_22 = arith.constant 0.000000e+00 : f32
    %71 = vector.broadcast %cst_22 : f32 to vector<8x64xf32>
    %72 = arith.subf %71, %70 : vector<8x64xf32>
    %73 = arith.select %63, %72, %67 : vector<8x64xi1>, vector<8x64xf32>
    %74 = arith.mulf %73, %44 : vector<8x64xf32>
    %75 = arith.addf %64, %74 : vector<8x64xf32>
    %cst_23 = arith.constant 2.500000e-01 : f32
    %76 = vector.broadcast %cst_23 : f32 to vector<8x64xf32>
    %77 = arith.mulf %75, %76 : vector<8x64xf32>
    %78 = arith.mulf %39, %42 : vector<8x64xf32>
    %79 = vector.extract_strided_slice %39 {offsets = [0, 56], sizes = [8, 8], strides = [1, 1]} : vector<8x64xf32> to vector<8x8xf32>
    %80 = vector.extract_strided_slice %39 {offsets = [0, 0], sizes = [8, 56], strides = [1, 1]} : vector<8x64xf32> to vector<8x56xf32>
    %81 = tpu.concatenate %79, %80 in 1 : vector<8x8xf32>, vector<8x56xf32> -> vector<8x64xf32>
    %82 = vector.extract_strided_slice %39 {offsets = [0, 8], sizes = [8, 56], strides = [1, 1]} : vector<8x64xf32> to vector<8x56xf32>
    %83 = vector.extract_strided_slice %39 {offsets = [0, 0], sizes = [8, 8], strides = [1, 1]} : vector<8x64xf32> to vector<8x8xf32>
    %84 = tpu.concatenate %82, %83 in 1 : vector<8x56xf32>, vector<8x8xf32> -> vector<8x64xf32>
    %cst_24 = arith.constant 0.000000e+00 : f32
    %85 = vector.broadcast %cst_24 : f32 to vector<8x64xf32>
    %86 = arith.subf %85, %84 : vector<8x64xf32>
    %87 = arith.select %63, %86, %81 : vector<8x64xi1>, vector<8x64xf32>
    %88 = arith.mulf %87, %44 : vector<8x64xf32>
    %89 = arith.addf %78, %88 : vector<8x64xf32>
    %90 = vector.extract_strided_slice %77 {offsets = [0, 0], sizes = [8, 16], strides = [1, 1]} : vector<8x64xf32> to vector<8x16xf32>
    %91 = arith.truncf %90 : vector<8x16xf32> to vector<8x16xbf16>
    %c0_25 = arith.constant 0 : index
    %c0_26 = arith.constant 0 : index
    %c0_27 = arith.constant 0 : index
    %c0_28 = arith.constant 0 : index
    %92 = vector.load %arg9[%c0_25, %c0_26, %c0_27, %c0_28] : memref<1x4x8x16xbf16, #tpu.memory_space<vmem>>, vector<1x1x8x16xbf16>
    %93 = vector.shape_cast %92 : vector<1x1x8x16xbf16> to vector<8x16xbf16>
    %94 = vector.shape_cast %91 : vector<8x16xbf16> to vector<1x1x8x16xbf16>
    tpu.vector_store %arg9[%c0_25, %c0_26, %c0_27, %c0_28], %94 {strides = array<i32>} : memref<1x4x8x16xbf16, #tpu.memory_space<vmem>>, vector<1x1x8x16xbf16>,
    %95 = vector.extract_strided_slice %89 {offsets = [0, 0], sizes = [8, 16], strides = [1, 1]} : vector<8x64xf32> to vector<8x16xf32>
    %96 = arith.truncf %95 : vector<8x16xf32> to vector<8x16xbf16>
    %c0_29 = arith.constant 0 : index
    %c0_30 = arith.constant 0 : index
    %c0_31 = arith.constant 0 : index
    %c0_32 = arith.constant 0 : index
    %97 = vector.load %arg10[%c0_29, %c0_30, %c0_31, %c0_32] : memref<1x4x8x16xbf16, #tpu.memory_space<vmem>>, vector<1x1x8x16xbf16>
    %98 = vector.shape_cast %97 : vector<1x1x8x16xbf16> to vector<8x16xbf16>
    %99 = vector.shape_cast %96 : vector<8x16xbf16> to vector<1x1x8x16xbf16>
    tpu.vector_store %arg10[%c0_29, %c0_30, %c0_31, %c0_32], %99 {strides = array<i32>} : memref<1x4x8x16xbf16, #tpu.memory_space<vmem>>, vector<1x1x8x16xbf16>,
    %100 = vector.extract_strided_slice %40 {offsets = [0, 0], sizes = [8, 16], strides = [1, 1]} : vector<8x64xf32> to vector<8x16xf32>
    %101 = arith.truncf %100 : vector<8x16xf32> to vector<8x16xbf16>
    %c0_33 = arith.constant 0 : index
    %c0_34 = arith.constant 0 : index
    %c0_35 = arith.constant 0 : index
    %c0_36 = arith.constant 0 : index
    %102 = vector.load %arg11[%c0_33, %c0_34, %c0_35, %c0_36] : memref<1x4x8x16xbf16, #tpu.memory_space<vmem>>, vector<1x1x8x16xbf16>
    %103 = vector.shape_cast %102 : vector<1x1x8x16xbf16> to vector<8x16xbf16>
    %104 = vector.shape_cast %101 : vector<8x16xbf16> to vector<1x1x8x16xbf16>
    tpu.vector_store %arg11[%c0_33, %c0_34, %c0_35, %c0_36], %104 {strides = array<i32>} : memref<1x4x8x16xbf16, #tpu.memory_space<vmem>>, vector<1x1x8x16xbf16>,
    %105 = vector.extract_strided_slice %77 {offsets = [0, 16], sizes = [8, 16], strides = [1, 1]} : vector<8x64xf32> to vector<8x16xf32>
    %106 = arith.truncf %105 : vector<8x16xf32> to vector<8x16xbf16>
    %c0_37 = arith.constant 0 : index
    %c1 = arith.constant 1 : index
    %c0_38 = arith.constant 0 : index
    %c0_39 = arith.constant 0 : index
    %107 = vector.load %arg9[%c0_37, %c1, %c0_38, %c0_39] : memref<1x4x8x16xbf16, #tpu.memory_space<vmem>>, vector<1x1x8x16xbf16>
    %108 = vector.shape_cast %107 : vector<1x1x8x16xbf16> to vector<8x16xbf16>
    %109 = vector.shape_cast %106 : vector<8x16xbf16> to vector<1x1x8x16xbf16>
    tpu.vector_store %arg9[%c0_37, %c1, %c0_38, %c0_39], %109 {strides = array<i32>} : memref<1x4x8x16xbf16, #tpu.memory_space<vmem>>, vector<1x1x8x16xbf16>,
    %110 = vector.extract_strided_slice %89 {offsets = [0, 16], sizes = [8, 16], strides = [1, 1]} : vector<8x64xf32> to vector<8x16xf32>
    %111 = arith.truncf %110 : vector<8x16xf32> to vector<8x16xbf16>
    %c0_40 = arith.constant 0 : index
    %c1_41 = arith.constant 1 : index
    %c0_42 = arith.constant 0 : index
    %c0_43 = arith.constant 0 : index
    %112 = vector.load %arg10[%c0_40, %c1_41, %c0_42, %c0_43] : memref<1x4x8x16xbf16, #tpu.memory_space<vmem>>, vector<1x1x8x16xbf16>
    %113 = vector.shape_cast %112 : vector<1x1x8x16xbf16> to vector<8x16xbf16>
    %114 = vector.shape_cast %111 : vector<8x16xbf16> to vector<1x1x8x16xbf16>
    tpu.vector_store %arg10[%c0_40, %c1_41, %c0_42, %c0_43], %114 {strides = array<i32>} : memref<1x4x8x16xbf16, #tpu.memory_space<vmem>>, vector<1x1x8x16xbf16>,
    %115 = vector.extract_strided_slice %40 {offsets = [0, 16], sizes = [8, 16], strides = [1, 1]} : vector<8x64xf32> to vector<8x16xf32>
    %116 = arith.truncf %115 : vector<8x16xf32> to vector<8x16xbf16>
    %c0_44 = arith.constant 0 : index
    %c1_45 = arith.constant 1 : index
    %c0_46 = arith.constant 0 : index
    %c0_47 = arith.constant 0 : index
    %117 = vector.load %arg11[%c0_44, %c1_45, %c0_46, %c0_47] : memref<1x4x8x16xbf16, #tpu.memory_space<vmem>>, vector<1x1x8x16xbf16>
    %118 = vector.shape_cast %117 : vector<1x1x8x16xbf16> to vector<8x16xbf16>
    %119 = vector.shape_cast %116 : vector<8x16xbf16> to vector<1x1x8x16xbf16>
    tpu.vector_store %arg11[%c0_44, %c1_45, %c0_46, %c0_47], %119 {strides = array<i32>} : memref<1x4x8x16xbf16, #tpu.memory_space<vmem>>, vector<1x1x8x16xbf16>,
    %120 = vector.extract_strided_slice %77 {offsets = [0, 32], sizes = [8, 16], strides = [1, 1]} : vector<8x64xf32> to vector<8x16xf32>
    %121 = arith.truncf %120 : vector<8x16xf32> to vector<8x16xbf16>
    %c0_48 = arith.constant 0 : index
    %c2 = arith.constant 2 : index
    %c0_49 = arith.constant 0 : index
    %c0_50 = arith.constant 0 : index
    %122 = vector.load %arg9[%c0_48, %c2, %c0_49, %c0_50] : memref<1x4x8x16xbf16, #tpu.memory_space<vmem>>, vector<1x1x8x16xbf16>
    %123 = vector.shape_cast %122 : vector<1x1x8x16xbf16> to vector<8x16xbf16>
    %124 = vector.shape_cast %121 : vector<8x16xbf16> to vector<1x1x8x16xbf16>
    tpu.vector_store %arg9[%c0_48, %c2, %c0_49, %c0_50], %124 {strides = array<i32>} : memref<1x4x8x16xbf16, #tpu.memory_space<vmem>>, vector<1x1x8x16xbf16>,
    %125 = vector.extract_strided_slice %89 {offsets = [0, 32], sizes = [8, 16], strides = [1, 1]} : vector<8x64xf32> to vector<8x16xf32>
    %126 = arith.truncf %125 : vector<8x16xf32> to vector<8x16xbf16>
    %c0_51 = arith.constant 0 : index
    %c2_52 = arith.constant 2 : index
    %c0_53 = arith.constant 0 : index
    %c0_54 = arith.constant 0 : index
    %127 = vector.load %arg10[%c0_51, %c2_52, %c0_53, %c0_54] : memref<1x4x8x16xbf16, #tpu.memory_space<vmem>>, vector<1x1x8x16xbf16>
    %128 = vector.shape_cast %127 : vector<1x1x8x16xbf16> to vector<8x16xbf16>
    %129 = vector.shape_cast %126 : vector<8x16xbf16> to vector<1x1x8x16xbf16>
    tpu.vector_store %arg10[%c0_51, %c2_52, %c0_53, %c0_54], %129 {strides = array<i32>} : memref<1x4x8x16xbf16, #tpu.memory_space<vmem>>, vector<1x1x8x16xbf16>,
    %130 = vector.extract_strided_slice %40 {offsets = [0, 32], sizes = [8, 16], strides = [1, 1]} : vector<8x64xf32> to vector<8x16xf32>
    %131 = arith.truncf %130 : vector<8x16xf32> to vector<8x16xbf16>
    %c0_55 = arith.constant 0 : index
    %c2_56 = arith.constant 2 : index
    %c0_57 = arith.constant 0 : index
    %c0_58 = arith.constant 0 : index
    %132 = vector.load %arg11[%c0_55, %c2_56, %c0_57, %c0_58] : memref<1x4x8x16xbf16, #tpu.memory_space<vmem>>, vector<1x1x8x16xbf16>
    %133 = vector.shape_cast %132 : vector<1x1x8x16xbf16> to vector<8x16xbf16>
    %134 = vector.shape_cast %131 : vector<8x16xbf16> to vector<1x1x8x16xbf16>
    tpu.vector_store %arg11[%c0_55, %c2_56, %c0_57, %c0_58], %134 {strides = array<i32>} : memref<1x4x8x16xbf16, #tpu.memory_space<vmem>>, vector<1x1x8x16xbf16>,
    %135 = vector.extract_strided_slice %77 {offsets = [0, 48], sizes = [8, 16], strides = [1, 1]} : vector<8x64xf32> to vector<8x16xf32>
    %136 = arith.truncf %135 : vector<8x16xf32> to vector<8x16xbf16>
    %c0_59 = arith.constant 0 : index
    %c3 = arith.constant 3 : index
    %c0_60 = arith.constant 0 : index
    %c0_61 = arith.constant 0 : index
    %137 = vector.load %arg9[%c0_59, %c3, %c0_60, %c0_61] : memref<1x4x8x16xbf16, #tpu.memory_space<vmem>>, vector<1x1x8x16xbf16>
    %138 = vector.shape_cast %137 : vector<1x1x8x16xbf16> to vector<8x16xbf16>
    %139 = vector.shape_cast %136 : vector<8x16xbf16> to vector<1x1x8x16xbf16>
    tpu.vector_store %arg9[%c0_59, %c3, %c0_60, %c0_61], %139 {strides = array<i32>} : memref<1x4x8x16xbf16, #tpu.memory_space<vmem>>, vector<1x1x8x16xbf16>,
    %140 = vector.extract_strided_slice %89 {offsets = [0, 48], sizes = [8, 16], strides = [1, 1]} : vector<8x64xf32> to vector<8x16xf32>
    %141 = arith.truncf %140 : vector<8x16xf32> to vector<8x16xbf16>
    %c0_62 = arith.constant 0 : index
    %c3_63 = arith.constant 3 : index
    %c0_64 = arith.constant 0 : index
    %c0_65 = arith.constant 0 : index
    %142 = vector.load %arg10[%c0_62, %c3_63, %c0_64, %c0_65] : memref<1x4x8x16xbf16, #tpu.memory_space<vmem>>, vector<1x1x8x16xbf16>
    %143 = vector.shape_cast %142 : vector<1x1x8x16xbf16> to vector<8x16xbf16>
    %144 = vector.shape_cast %141 : vector<8x16xbf16> to vector<1x1x8x16xbf16>
    tpu.vector_store %arg10[%c0_62, %c3_63, %c0_64, %c0_65], %144 {strides = array<i32>} : memref<1x4x8x16xbf16, #tpu.memory_space<vmem>>, vector<1x1x8x16xbf16>,
    %145 = vector.extract_strided_slice %40 {offsets = [0, 48], sizes = [8, 16], strides = [1, 1]} : vector<8x64xf32> to vector<8x16xf32>
    %146 = arith.truncf %145 : vector<8x16xf32> to vector<8x16xbf16>
    %c0_66 = arith.constant 0 : index
    %c3_67 = arith.constant 3 : index
    %c0_68 = arith.constant 0 : index
    %c0_69 = arith.constant 0 : index
    %147 = vector.load %arg11[%c0_66, %c3_67, %c0_68, %c0_69] : memref<1x4x8x16xbf16, #tpu.memory_space<vmem>>, vector<1x1x8x16xbf16>
    %148 = vector.shape_cast %147 : vector<1x1x8x16xbf16> to vector<8x16xbf16>
    %149 = vector.shape_cast %146 : vector<8x16xbf16> to vector<1x1x8x16xbf16>
    tpu.vector_store %arg11[%c0_66, %c3_67, %c0_68, %c0_69], %149 {strides = array<i32>} : memref<1x4x8x16xbf16, #tpu.memory_space<vmem>>, vector<1x1x8x16xbf16>,
    return
  }
  func.func @transform_0(%arg0: i32, %arg1: i32) -> (i32, i32, i32) {
    %c0_i32 = arith.constant 0 : i32
    %c0_i32_0 = arith.constant 0 : i32
    return %arg0, %arg1, %c0_i32 : i32, i32, i32
  }
  func.func @transform_1(%arg0: i32, %arg1: i32) -> (i32, i32) {
    %c0_i32 = arith.constant 0 : i32
    %c0_i32_0 = arith.constant 0 : i32
    %c0_i32_1 = arith.constant 0 : i32
    return %c0_i32, %c0_i32_0 : i32, i32
  }
  func.func @transform_2(%arg0: i32, %arg1: i32) -> (i32, i32) {
    %c0_i32 = arith.constant 0 : i32
    %c0_i32_0 = arith.constant 0 : i32
    %c0_i32_1 = arith.constant 0 : i32
    return %c0_i32, %c0_i32_0 : i32, i32
  }
  func.func @transform_3(%arg0: i32, %arg1: i32) -> (i32, i32) {
    %c0_i32 = arith.constant 0 : i32
    %c0_i32_0 = arith.constant 0 : i32
    %c0_i32_1 = arith.constant 0 : i32
    return %c0_i32, %c0_i32_0 : i32, i32
  }
  func.func @transform_4(%arg0: i32, %arg1: i32) -> (i32, i32) {
    %c0_i32 = arith.constant 0 : i32
    %c0_i32_0 = arith.constant 0 : i32
    %c0_i32_1 = arith.constant 0 : i32
    return %c0_i32, %c0_i32_0 : i32, i32
  }
  func.func @transform_5(%arg0: i32, %arg1: i32) -> (i32, i32) {
    %c0_i32 = arith.constant 0 : i32
    %c0_i32_0 = arith.constant 0 : i32
    return %arg1, %c0_i32 : i32, i32
  }
  func.func @transform_6(%arg0: i32, %arg1: i32) -> (i32, i32) {
    %c0_i32 = arith.constant 0 : i32
    %c0_i32_0 = arith.constant 0 : i32
    return %arg1, %c0_i32 : i32, i32
  }
  func.func @transform_7(%arg0: i32, %arg1: i32) -> (i32, i32, i32, i32) {
    %c0_i32 = arith.constant 0 : i32
    %c0_i32_0 = arith.constant 0 : i32
    %c0_i32_1 = arith.constant 0 : i32
    return %arg0, %c0_i32, %arg1, %c0_i32_0 : i32, i32, i32, i32
  }
  func.func @transform_8(%arg0: i32, %arg1: i32) -> (i32, i32, i32, i32) {
    %c0_i32 = arith.constant 0 : i32
    %c0_i32_0 = arith.constant 0 : i32
    %c0_i32_1 = arith.constant 0 : i32
    return %arg0, %c0_i32, %arg1, %c0_i32_0 : i32, i32, i32, i32
  }
  func.func @transform_9(%arg0: i32, %arg1: i32) -> (i32, i32, i32, i32) {
    %c0_i32 = arith.constant 0 : i32
    %c0_i32_0 = arith.constant 0 : i32
    %c0_i32_1 = arith.constant 0 : i32
    return %arg0, %c0_i32, %arg1, %c0_i32_0 : i32, i32, i32, i32
  }
}

</mosaic_0001>

<bundles_post_ra>
// kernel: tpu_custom_call.1
= control target key start
LH: loop header
LB: loop body
LE: loop exit
PB: predicated region body
PF: predicated region fallthrough
CT: control target
= control target key end

     0   :  { %s2165_s0 = inlined_call_operand.hbm [shape: f32[2,16,64], index: 0, kind: input, shape index: {}]   ;;  %s2166_s1 = inlined_call_operand.vmem [shape: f32[1,64], index: 1, kind: input, shape index: {}]   ;;  %s2167_s2 = inlined_call_operand.hbm [shape: f32[1,64], index: 2, kind: input, shape index: {}]   ;;  %s2168_s3 = inlined_call_operand.hbm [shape: bf16[64,192], index: 3, kind: input, shape index: {}]   ;;  %s2169_s4 = inlined_call_operand.vmem [shape: f32[1,192], index: 4, kind: input, shape index: {}]   ;;  %s2170_s5 = inlined_call_operand.hbm [shape: f32[16,16], index: 5, kind: input, shape index: {}]   ;;  %s2171_s6 = inlined_call_operand.hbm [shape: f32[16,16], index: 6, kind: input, shape index: {}]   ;;  %s2172_s7 = inlined_call_operand.hbm [shape: bf16[2,4,16,16], index: 7, kind: output, shape index: {0}]   ;;  %s2173_s8 = inlined_call_operand.hbm [shape: bf16[2,4,16,16], index: 8, kind: output, shape index: {1}]   ;;  %s2174_s9 = inlined_call_operand.hbm [shape: bf16[2,4,16,16], index: 9, kind: output, shape index: {2}]  }
   0x1   :  { %2199 = sst [smem:[#allocation30_spill]] %s2166_s1 }
   0x2   :  { %2200 = sst [smem:[#allocation31_spill]] %s2167_s2 }
   0x3   :  { %2201 = sst [smem:[#allocation32_spill]] %s2168_s3 }
   0x4   :  { %2202 = sst [smem:[#allocation33_spill]] %s2169_s4 }
   0x5   :  { %2203 = sst [smem:[#allocation34_spill]] %s2170_s5 }
   0x6   :  { %2204 = sst [smem:[#allocation35_spill]] %s2172_s7 }
   0x7   :  { %2205 = sst [smem:[#allocation36_spill]] %s2173_s8 }
   0x8   :  { %2206 = sst [smem:[#allocation37_spill]] %s2174_s9 }
   0x9   :  { %15 = vsyncpa [#allocation3], 0 }
   0xa   :  { %17 = vsyncpa [#allocation3 + $0x1], 0 }
   0xb   :  { %18 = vsyncpa [#allocation6], 0 }
   0xc   :  { %19 = vsyncpa [#allocation9], 0 }
   0xd   :  { %21 = vsyncpa [#allocation9 + $0x1], 0 }
   0xe   :  { %22 = vsyncpa [#allocation4], 0 }
   0xf   :  { %24 = vsyncpa [#allocation4 + $0x1], 0 }
  0x10   :  { %25 = vsyncpa [#allocation13], 0 }
  0x11   :  { %27 = vsyncpa [#allocation13 + $0x1], 0  ;;  %s1674_s30 = smov 0   ;;  %s1676_s10 = smov 0  }
  0x12   :  { %s1678_s11 = smov 0   ;;  %s1680_s12 = smov 0  }
  0x13   :  { %s1682_s13 = smov 0   ;;  %s1684_s14 = smov 0  }
  0x14   :  { %s1686_s15 = smov 0   ;;  %s1688_s16 = smov 0  }
  0x15   :  { %s1690_s17 = smov 0   ;;  %s1692_s18 = smov 0  }
  0x16   :  { %s1694_s19 = smov 0  }
  0x17 LB: > { %2207 = sst [smem:[#allocation20_spill]] %s1562_s10  ;;  %s1730_s20 = sadd.s32 4294967295, %s1598_s19   ;;  %s1598_s19 = sphi %s1694_s19, %s33_s19   ;;  %s1594_s18 = sphi %s1692_s18, %s2268_s18   ;;  %s1590_s17 = sphi %s1690_s17, %s2267_s17   ;;  %s1586_s16 = sphi %s1688_s16, %s2266_s16   ;;  %s1582_s15 = sphi %s1686_s15, %s2265_s15   ;;  %s1578_s14 = sphi %s1684_s14, %s2264_s14   ;;  %s1574_s13 = sphi %s1682_s13, %s2263_s13   ;;  %s1570_s12 = sphi %s1680_s12, %s2262_s12   ;;  %s1566_s11 = sphi %s1678_s11, %s2259_s11   ;;  %s1562_s10 = sphi %s1676_s10, %s2258_s10   ;;  %s1558_s30 = sphi %s1674_s30, %s2257_s30  }
  0x18   : > { %2208 = sst [smem:[#allocation21_spill]] %s1566_s11  ;;  %p1048_p0 = scmp.ge.s32.totalorder %s1598_s19, 1 }
  0x19   : > { %2209 = sst [smem:[#allocation22_spill]] %s1570_s12  ;;  %p2179_p1 = scmp.eq.s32.totalorder %s1730_s20, 0 }
  0x1a   : > { %2210 = sst [smem:[#allocation23_spill]] %s1582_s15  ;;  %p298_p2 = scmp.lt.s32.totalorder %s1598_s19, 5 }
  0x1b   : > { %2211 = sst [smem:[#allocation24_spill]] %s1586_s16  ;;  %s1600_s22 = smov [#allocation5]  }
  0x1c   : > { %p1735_p3 = pnand %p1048_p0, %p298_p2  ;;  %s314_s23 = sshll.u32 %s1600_s22, 4  ;;  %s315_s23 = int_to_ptr.vmem [resolvable:$true] %s314_s23 }
  0x1d   : > { %s1289_s25 = scalar_lea.vmem %s315_s23, 16  ;;  %s1296_s26 = scalar_lea.vmem %s315_s23, 32 }
  0x1e   : > { %s2212_s21 = scalar_select %p1735_p3, 1, 0 }
  0x1f   : > { %p1125_p4 = pneg %p1735_p3  ;;  %p1290_p7 = scmp.ne.s32.totalorder %s315_s23, %s1289_s25 }
  0x20   : > { %p1297_p10 = scmp.lt.s32.totalorder %s315_s23, %s315_s23  ;;  %p1298_p11 = scmp.lt.s32.totalorder %s1296_s26, %s1289_s25 }
  0x21   : > { %p1743_p5 = pnand %p1125_p4, %p2179_p1 }
  0x22   : > { %p1299_p12 = por %p1298_p11, %p1297_p10 }
  0x23   : > { %p2182_p6 = pneg %p1743_p5 }
  0x25   : > { %p1292_p8 = pnand %p1290_p7, %p2182_p6 }
  0x27   : > { %p1293_p9 = pneg %p1292_p8 }
  0x29   : > { %p1300_p13 = pnand %p1299_p12, %p1293_p9 }
  0x2b   : > { %1303 = shalt.err (!%p1300_p13)
}
  0x2c   : > { %s2214_s2 = sld [smem:[#allocation31_spill]]  ;;  %s42_s29 = sadd.s32 1, %s1590_s17 }
  0x2d   : > { %p2181_p0 = scmp.eq.s32.totalorder %s1598_s19, 0  ;;  %p1759_p2 = scmp.ge.s32.totalorder %s42_s29, 2 }
  0x2e   : > { %s164_s25 = sadd.s32 1, %s1566_s11  ;;  %p171_p4 = scmp.ne.s32.totalorder %s1566_s11, %s1562_s10 }
  0x2f   : > { %s2215_s22 = scalar_select %p1759_p2, 1, 0 }
  0x30   : > { %p177_p7 = scmp.ne.s32.totalorder %s1562_s10, %s1558_s30  ;;  %s2270_s29 = smov (%p1759_p2, %s42_s29), 0 }
  0x31   : > { %2216 = sst [smem:[#allocation25_spill]] %s2270_s29  ;;  %p1774_p8 = por %p171_p4, %p2181_p0 }
  0x32   : > { %1128 = dma.hbm_to_vmem [thread:$0]  (!%p1743_p5), %s2214_s2, 16, %s315_s23, [#allocation6]  }
  0x33   : > { %p1780_p9 = por %p177_p7, %p2179_p1  ;;  %s1786_s27 = ssub.s32 %s1590_s17, %s2270_s29 }
  0x34   : > { %p2180_p10 = scmp.lt.s32.totalorder %s1598_s19, 4  ;;  %p162_p11 = scmp.eq.s32.totalorder %s1786_s27, 0 }
  0x35   : > { %s2218_s26 = scalar_select %p1780_p9, 1, 0 }
  0x36   : > { %s361_s30 = sand.u32 1, %s1598_s19   ;;  %s363_s28 = sand.u32 1, %s1566_s11  }
  0x37   : > { %2219 = sst [smem:[#allocation26_spill]] %s2218_s26  ;;  %s1795_s9 = sshll.u32 %s363_s28, 3 }
  0x38   : > { %s1793_s2 = scalar_select %p162_p11, %s1566_s11, %s164_s25  }
  0x39   : > { %s2183_s7 = sshll.u32 %s1590_s17, 7  ;;  %s2221_s5 = sld [smem:[#allocation34_spill]] }
  0x3a   : > { %2220 = sst [smem:[#allocation27_spill]] %s1793_s2  ;;  %s365_s4 = scalar_lea.vmem [#allocation8], %s1795_s9 }
  0x3b   : > { %s372_s1 = sshll.u32 %s365_s4, 4  ;;  %p1808_p12 = pnand %p2180_p10, %p1774_p8  ;;  %s373_s1 = int_to_ptr.vmem [resolvable:$true] %s372_s1 }
  0x3c   : > { %s1813_s25 = scalar_lea.sflag [#allocation9], %s361_s30  ;;  %s1317_s28 = scalar_lea.vmem %s373_s1, 128 }
  0x3d   : > { %p2184_p4 = pneg %p1808_p12  ;;  %p1318_p7 = scmp.ne.s32.totalorder %s373_s1, %s1317_s28 }
  0x3e   : > { %s1601_s4 = smov [#allocation8]  }
  0x3f   : > { %s370_s16 = scalar_lea.hbm %s2221_s5, %s2183_s7  ;;  %p1320_p11 = pnand %p1318_p7, %p2184_p4 }
  0x40   : > { %s1322_s8 = sshll.u32 %s1601_s4, 4  ;;  %s1323_s8 = int_to_ptr.vmem [resolvable:$false] %s1322_s8 }
  0x41   : > { %p1321_p1 = pneg %p1320_p11  ;;  %s1324_s15 = scalar_lea.vmem %s1323_s8, 256 }
  0x42   : > { %p1325_p8 = scmp.lt.s32.totalorder %s373_s1, %s1323_s8  ;;  %p1326_p10 = scmp.lt.s32.totalorder %s1324_s15, %s1317_s28 }
  0x44   : > { %p1327_p0 = por %p1326_p10, %p1325_p8 }
  0x46   : > { %p1328_p6 = pnand %p1327_p0, %p1321_p1 }
  0x48   : > { %1331 = shalt.err (!%p1328_p6)
}
  0x49   : > { %1138 = dma.hbm_to_vmem [thread:$0]  (!%p1808_p12), %s370_s16, 128, %s373_s1, %s1813_s25  }
  0x4a   : > { %s1602_s23 = smov [#allocation7]   ;;  %p2223_p11 = pneg %p1743_p5 }
  0x4b   : > { %s324_s30 = sshll.u32 %s1602_s23, 4  ;;  %s325_s30 = int_to_ptr.vmem [resolvable:$true] %s324_s30 }
  0x4c   : > { %s1343_s7 = scalar_lea.vmem %s325_s30, 1024  ;;  %p1351_p9 = scmp.lt.s32.totalorder %s325_s30, %s325_s30 }
  0x4d   : > { %p1344_p7 = scmp.ne.s32.totalorder %s325_s30, %s1343_s7  ;;  %p1352_p3 = scmp.lt.s32.totalorder %s1343_s7, %s1343_s7 }
  0x4f   : > { %p1346_p4 = pnand %p1344_p7, %p2223_p11  ;;  %p1353_p2 = por %p1352_p3, %p1351_p9 }
  0x51   : > { %p1347_p13 = pneg %p1346_p4 }
  0x53   : > { %p1354_p10 = pnand %p1353_p2, %p1347_p13 }
  0x55   : > { %1357 = shalt.err (!%p1354_p10)
}
  0x56   : > { %s1603_s28 = smov 128   ;;  %s1604_s1 = smov 8  }
  0x57   : > { %s2224_s3 = sld [smem:[#allocation32_spill]]  ;;  %s2188_s4 = sadd.s32 4294967294, %s1598_s19  }
  0x58   : > { %s45_s8 = sadd.s32 1, %s1594_s18  ;;  %s54_s15 = sadd.s32 1, %s1578_s14 }
  0x59   : > { %p2225_p1 = scmp.ne.s32.totalorder %s2215_s22, 0  ;;  %p61_p3 = scmp.ne.s32.totalorder %s1578_s14, %s1574_s13 }
  0x5a   : > { %p67_p6 = scmp.ne.s32.totalorder %s1574_s13, %s1570_s12  ;;  %p235_p2 = scmp.eq.s32.totalorder %s2188_s4, 3 }
  0x5b   : > { %s2272_s8 = smov (!%p2225_p1, %s45_s8), %s1594_s18  ;;  %p2226_p9 = scmp.eq.s32.totalorder %s1598_s19, 0 }
  0x5c   : > { %p47_p0 = scmp.ge.s32.totalorder %s2272_s8, 2  ;;  %p2231_p8 = scmp.eq.s32.totalorder %s1730_s20, 3 }
  0x5d   : > { %1131 = dma.hbm_to_vmem [thread:$0]  (!%p1743_p5), %s2224_s3, 1024, %s325_s30, [#allocation6], %s1603_s28, %s1603_s28, %s1604_s1  }
  0x5e   : > { %p1845_p13 = por %p2226_p9, %p61_p3  ;;  %p2228_p5 = scmp.eq.s32.totalorder %s1730_s20, 0 }
  0x5f   : > { %s2274_s8 = smov (%p47_p0, %s2272_s8), 0  ;;  %p1859_p7 = por %p2231_p8, %p61_p3 }
  0x60   : > { %p1851_p4 = por %p2228_p5, %p67_p6  ;;  %2230 = sst [smem:[#allocation28_spill]] %s2274_s8 }
  0x61   : > { %s2232_s22 = scalar_select %p1859_p7, 1, 0 }
  0x62   : > { %p1863_p11 = por %p235_p2, %p67_p6  ;;  %s49_s28 = ssub.s32 %s1594_s18, %s2274_s8 }
  0x63   : > { %2233 = sst [smem:[#allocation29_spill]] %s2232_s22  ;;  %s341_s1 = sand.u32 1, %s1578_s14  }
  0x64   : > { %s51_s7 = sor.u32 %s1786_s27, %s49_s28  ;;  %s1052_s16 = sshll.u32 %s341_s1, 3 }
  0x65   : > { %p52_p10 = scmp.eq.s32.totalorder %s51_s7, 0  ;;  %s1053_s4 = sshll.u32 %s1594_s18, 1 }
  0x66   : > { %s350_s5 = sadd.s32 %s1590_s17, %s1053_s4  ;;  %s345_s2 = scalar_lea.vmem [#allocation2], %s1052_s16 }
  0x67   : > { %s1873_s3 = scalar_select %p52_p10, %s1578_s14, %s54_s15  }
  0x68   : > { %s354_s11 = sshll.u32 %s345_s2, 4  ;;  %s1054_s12 = sshll.u32 %s350_s5, 7  ;;  %s355_s11 = int_to_ptr.vmem [resolvable:$true] %s354_s11 }
  0x69   : > { %s352_s10 = scalar_lea.hbm %s2165_s0, %s1054_s12  ;;  %p2235_p1 = scmp.lt.s32.totalorder %s1598_s19, 4 }
  0x6a   : > { %s2237_s27 = sshll.u32 %s1590_s17, 7  ;;  %s383_s2 = scalar_lea.vmem [#allocation10], %s1795_s9 }
  0x6b   : > { %p1883_p3 = pnand %p2235_p1, %p1845_p13  ;;  %s1892_s4 = scalar_lea.hbm %s2171_s6, %s2237_s27 }
  0x6c   : > { %s390_s5 = sshll.u32 %s383_s2, 4  ;;  %s342_s15 = scalar_lea.sflag [#allocation3], %s341_s1  ;;  %s1895_s5 = int_to_ptr.vmem [resolvable:$true] %s390_s5 }
  0x6d   : > { %p1360_p6 = pneg %p1883_p3  ;;  %s1371_s12 = scalar_lea.vmem %s355_s11, 128 }
  0x6e   : > { %p1372_p0 = scmp.ne.s32.totalorder %s355_s11, %s1371_s12  ;;  %s1605_s26 = smov [#allocation2]  }
  0x6f   : > { %s1376_s24 = sshll.u32 %s1605_s26, 4  ;;  %s1377_s24 = int_to_ptr.vmem [resolvable:$false] %s1376_s24 }
  0x70   : > { %p1374_p2 = pnand %p1372_p0, %p1360_p6  ;;  %s1378_s22 = scalar_lea.vmem %s1377_s24, 256 }
  0x71   : > { %p1379_p13 = scmp.lt.s32.totalorder %s355_s11, %s1377_s24  ;;  %p1380_p5 = scmp.lt.s32.totalorder %s1378_s22, %s1371_s12 }
  0x72   : > { %p1375_p9 = pneg %p1374_p2 }
  0x73   : > { %p1381_p8 = por %p1380_p5, %p1379_p13 }
  0x75   : > { %p1382_p10 = pnand %p1381_p8, %p1375_p9 }
  0x77   : > { %1385 = shalt.err (!%p1382_p10)
}
  0x78   : > { %1135 = dma.hbm_to_vmem [thread:$0]  (!%p1883_p3), %s352_s10, 128, %s355_s11, %s342_s15  }
  0x79   : > { %s1399_s9 = scalar_lea.vmem %s1895_s5, 128  ;;  %p2238_p6 = pneg %p1808_p12 }
  0x7a   : > { %p1400_p1 = scmp.ne.s32.totalorder %s1895_s5, %s1399_s9  ;;  %s1606_s1 = smov [#allocation10]  }
  0x7b   : > { %s1404_s16 = sshll.u32 %s1606_s1, 4  ;;  %s1405_s16 = int_to_ptr.vmem [resolvable:$false] %s1404_s16 }
  0x7c   : > { %p1402_p0 = pnand %p1400_p1, %p2238_p6  ;;  %s1406_s27 = scalar_lea.vmem %s1405_s16, 256 }
  0x7d   : > { %p1407_p13 = scmp.lt.s32.totalorder %s1895_s5, %s1405_s16  ;;  %p1408_p9 = scmp.lt.s32.totalorder %s1406_s27, %s1399_s9 }
  0x7e   : > { %p1403_p2 = pneg %p1402_p0 }
  0x7f   : > { %p1409_p5 = por %p1408_p9, %p1407_p13 }
  0x81   : > { %p1410_p8 = pnand %p1409_p5, %p1403_p2 }
  0x83   : > { %1413 = shalt.err (!%p1410_p8)
}
  0x84   : > { %1141 = dma.hbm_to_vmem [thread:$0]  (!%p1808_p12), %s1892_s4, 128, %s1895_s5, %s1813_s25  }
  0x85   : > { %p2239_p3 = scmp.ne.s32.totalorder %s2212_s21, 0 }
  0x86   : > { %s1915_s10 = sand.u32 (!%p2239_p3), 1, %s1574_s13  }
  0x87   : > { %399 = sbr.rel (%p2239_p3) target bundleno = 1091 (0x443), region = 48  ;;  %s1060_s11 = sshll.u32 (!%p2239_p3), %s1915_s10, 3 }
  0x88   : > { %s402_s8 = scalar_lea.sflag (!%p2239_p3), [#allocation3], %s1915_s10  ;;  %s405_s28 = scalar_lea.vmem (!%p2239_p3), [#allocation2], %s1060_s11 }
  0x8c   : > { %1537 = dma.done.wait (%p1851_p4), %s402_s8, 128  }
  0x8d   : > { %1539 = vsyncadd (%p1851_p4), %s402_s8, 4294967168  ;;  %p2240_p10 = scmp.eq.s32.totalorder %s1730_s20, 0 }
  0x8f   : > { %1541 = dma.done.wait (%p2240_p10), [#allocation6], 1040   ;;  %p2241_p12 = pmov %p2240_p10 }
  0x90   : > { %s2242_s21 = sld [smem:[#allocation20_spill]]  ;;  %s418_s25 = sand.u32 1, %s1730_s20  }
  0x91   : > { %1543 = vsyncadd (%p2241_p12), [#allocation6], 4294966256  ;;  %s2243_s29 = sld [smem:[#allocation26_spill]]  ;;  %s419_s2 = scalar_lea.sflag [#allocation9], %s418_s25 }
  0x96   : > { %s420_s7 = sand.u32 1, %s2242_s21  }
  0x97   : > { %s1929_s4 = sshll.u32 %s420_s7, 3  ;;  %p2244_p1 = scmp.ne.s32.totalorder %s2243_s29, 0 }
  0x98   : > { %s422_s5 = scalar_lea.vmem [#allocation8], %s1929_s4 }
  0x99   : > { %1545 = dma.done.wait (%p2244_p1), %s419_s2, 256  }
  0x9a   : > { %1547 = vsyncadd (%p2244_p1), %s419_s2, 4294967040  ;;  %vm490_vm0 = vcmask 523264   ;;  %v487_v0 = vld [vmem:[%s405_s28] sm:$0xff]  ;;  %v1269_v10 = vld [vmem:[#allocation7 + $0x20] ss:$8 sps:$4 sm:$0xff]   ;;  %v1607_v11 = vmov 0   ;;  %v530_v28 = vlaneseq }
  0x9b   : > { %v491_v1 = vsel %vm490_vm0, %v487_v0, 0.0  ;;  %v1264_v7 = vld [vmem:[#allocation7 + $0x34] ss:$8 sps:$4 sm:$0xff]   ;;  %v1266_v8 = vld [vmem:[#allocation7 + $0x30] ss:$8 sps:$4 sm:$0xff]   ;;  %615 = vmatprep.mubr.bf16.mxu0 %v1607_v11  ;;  %v1942_v16 = vld [vmem:[%s422_s5] sm:$0xff] }
  0x9c   : > { %492 = vadd.xlane.f32.xlu0 %v491_v1  ;;  %v1267_v9 = vld [vmem:[#allocation7 + $0x24] ss:$8 sps:$4 sm:$0xff]   ;;  %591 = vmatprep.subr.bf16.mxu0 %v1264_v7  ;;  %v1270_v12 = vld [vmem:[#allocation7 + $0x14] ss:$8 sps:$4 sm:$0xff]   ;;  %v1272_v13 = vld [vmem:[#allocation7 + $0x10] ss:$8 sps:$4 sm:$0xff]  }
  0x9d   : > { %592 = vmatpush1.bf16.msra.mxu0 %v1266_v8  ;;  %v1273_v14 = vld [vmem:[#allocation7 + $0x4] ss:$8 sps:$4 sm:$0xff]   ;;  %v1275_v15 = vld [vmem:[#allocation7] ss:$8 sps:$4 sm:$0xff]   ;;  %s431_s23 = scalar_lea.vmem [#allocation10], %s1929_s4  ;;  %s1608_s15 = smov 16  }
  0x9e   : > { %593 = vmatprep.subr.bf16.mxu0 %v1267_v9  ;;  %v641_v17 = vld [vmem:[%s431_s23] sm:$0xff]  ;;  %s1609_s12 = smov 48   ;;  %s1610_s26 = smov 32   ;;  %v531_v29 = vshrl.u32 %v530_v28, 7  ;;  %vm709_vm1 = vcmask 125952   ;;  %v656_v46 = vand.u32 127, %v530_v28 }
  0x9f   : > { %643 = vrot.lane.b32.xlu1 %v641_v17, %s1608_s15  ;;  %s2245_s9 = sld [smem:[#allocation30_spill]]  ;;  %v1069_v24 = vld [vmem:[#allocation5] ss:$0 sm:$0xff]  ;;  %s1962_s11 = sshll.u32 %s1915_s10, 4  ;;  %vm635_vm2 = vcmask 130048   ;;  %vm686_vm3 = vcmask 457728  }
  0xa0   : > { %v532_v30 = vsub.s32 0, %v531_v29  ;;  %s2246_s27 = sld [smem:[#allocation33_spill]]  ;;  %v536_v32 = vsub.s32 1, %v531_v29  ;;  %s1611_s8 = smov 120   ;;  %v661_v49 = vand.u32 15, %v656_v46  ;;  %vm637_vm4 = vcmask 261120  }
  0xa1   : > { %594 = vmatpush1.bf16.msra.mxu0 %v1269_v10  ;;  %s1968_s28 = scalar_lea.vmem [#allocation14], %s1962_s11  ;;  %s1612_s21 = smov 56   ;;  %vm678_vm5 = vcmask 64512   ;;  %vm639_vm6 = vcmask 392192  }
  0xa2   : > { %595 = vmatprep.subr.bf16.mxu0 %v1270_v12  ;;  %s1613_s29 = smov 72   ;;  %s1614_s7 = smov 8   ;;  %vm669_vm7 = vcmp.lt.s32.totalorder %v661_v49, 8 }
  0xa3   : > { %629 = vrot.lane.b32.xlu1 %v1942_v16, %s1610_s26  ;;  %s2197_s4 = smov 64   ;;  %s1616_s2 = smov 112  }
  0xa4   : > { %s1617_s5 = smov 96   ;;  %s1991_s23 = scalar_lea.vmem [#allocation11], %s1962_s11 }
  0xa5   : > { %596 = vmatpush1.bf16.msra.mxu0 %v1272_v13  ;;  %v1068_v22 = vld [vmem:[%s2245_s9] ss:$0 sm:$0xff]  ;;  %s2247_s24 = sld [smem:[#allocation24_spill]]  ;;  %s1618_s9 = smov 80  }
  0xa6   : > { %597 = vmatprep.subr.bf16.mxu0 %v1273_v14  ;;  %v528_v31 = vld [vmem:[%s2246_s27] sm:$0x3]  ;;  %s2248_s22 = sld [smem:[#allocation23_spill]]  ;;  %s478_s16 = scalar_lea.vmem [#allocation12], %s1962_s11 }
  0xa7   : > { %646 = vrot.lane.b32.xlu1 %v641_v17, %s1610_s26  ;;  %v533_v33 = vrot.slane %v528_v31, %v532_v30  ;;  %v537_v34 = vrot.slane %v528_v31, %v536_v32  ;;  %s814_s27 = sshll.u32 %s478_s16, 4  ;;  %s2250_s11 = sld [smem:[#allocation36_spill]]  ;;  %s2015_s27 = int_to_ptr.vmem [resolvable:$true] %s814_s27 }
  0xa9   : > { %598 = vmatpush1.bf16.msra.mxu0 %v1275_v15 }
 0x111   : > { %v644_v42 = vpop.permute.xlu1 %643 }
 0x112   : > { %v652_v50 = vsel %vm635_vm2, %v641_v17, %v644_v42 }
 0x115   : > { %v630_v43 = vpop.permute.xlu1 %629 }
 0x119   : > { %v647_v44 = vpop.permute.xlu1 %646 }
 0x11a   : > { %v653_v54 = vsel %vm637_vm4, %v652_v50, %v647_v44 }
 0x125   : > { %v493_v2 = vpop.xlane.xlu0 %492 }
 0x126   : > { %v495_v3 = vmul.f32 0.015625, %v493_v2 }
 0x128   : > { %v496_v4 = vsub.f32 %v487_v0, %v495_v3 }
 0x12a   : > { %v497_v5 = vmul.f32 %v496_v4, %v496_v4 }
 0x12c   : > { %v498_v6 = vsel %vm490_vm0, %v497_v5, 0.0 }
 0x12d   : > { %499 = vadd.xlane.f32.xlu0 %v498_v6 }
 0x143   : > { %626 = vrot.lane.b32.xlu0 %v1942_v16, %s1608_s15 }
 0x147   : > { %649 = vrot.lane.b32.xlu0 %v641_v17, %s1609_s12 }
 0x1b6   : > { %v500_v18 = vpop.xlane.xlu0 %499 }
 0x1b7   : > { %v501_v19 = vmul.f32 0.015625, %v500_v18 }
 0x1b9   : > { %v502_v20 = vadd.f32 1e-05, %v501_v19 }
 0x1ba   : > { %v627_v48 = vpop.permute.xlu0 %626 }
 0x1bb   : > { %1276 = vrsqrt.f32 %v502_v20  ;;  %v636_v58 = vsel %vm635_vm2, %v1942_v16, %v627_v48 }
 0x1bc   : > { %v638_v3 = vsel %vm637_vm4, %v636_v58, %v630_v43 }
 0x1be   : > { %v650_v55 = vpop.permute.xlu0 %649 }
 0x1bf   : > { %v654_v62 = vsel %vm639_vm6, %v653_v54, %v650_v55 }
 0x1c8   : > { %v1277_v21 = vpop.eup %1276 }
 0x1c9   : > { %v504_v23 = vmul.f32 %v1277_v21, %v496_v4 }
 0x1cb   : > { %v511_v25 = vmul.f32 %v1068_v22, %v504_v23 }
 0x1cd   : > { %v518_v26 = vadd.f32 %v1069_v24, %v511_v25 }
 0x1cf   : > { %v519_v27 = vpack.c.bf16 %v518_v26, %v518_v26 }
 0x1d1   : > { %1078 = vmatmul.mubr.msk.bf16.vlgmr.msra.gmra.mxu0 %vm490_vm0, %v519_v27 }
 0x291   : > { %v617_v35 = vpop.f32.mrf.mxu0 }
 0x292   : > { %v1959_v36 = vadd.f32 %v617_v35, %v533_v33 }
 0x293   : > { %v619_v37 = vpop.f32.mrf.mxu0 }
 0x294   : > { %v620_v38 = vadd.f32 %v619_v37, %v537_v34  ;;  %680 = vrot.lane.b32.xlu1 %v1959_v36, %s1611_s8 }
 0x295   : > { %v621_v39 = vpop.f32.mrf.mxu0 }
 0x296   : > { %v1965_v40 = vpack.c.bf16 %v620_v38, %v620_v38 }
 0x297   : > { %v622_v41 = vpop.f32.mrf.mxu0 }
 0x298   : > { %720 = vst.msk [vmem:[%s1968_s28] sm:$0xf] %vm709_vm1, %v1965_v40  ;;  %683 = vrot.lane.b32.xlu1 %v1959_v36, %s1612_s21 }
 0x29c   : > { %672 = vrot.lane.b32.xlu1 %v1959_v36, %s1613_s29 }
 0x2a0   : > { %675 = vrot.lane.b32.xlu1 %v1959_v36, %s1614_s7  ;;  %s2251_s7 = smov %s2250_s11 }
 0x2a4   : > { %632 = vrot.lane.b32.xlu1 %v1942_v16, %s1609_s12 }
 0x306   : > { %v681_v45 = vpop.permute.xlu1 %680 }
 0x30a   : > { %v684_v47 = vpop.permute.xlu1 %683 }
 0x30b   : > { %v699_v52 = vsel %vm686_vm3, %v684_v47, %v681_v45  ;;  %v687_v53 = vsel %vm686_vm3, %v681_v45, %v684_v47 }
 0x30c   : > { %v700_v56 = vsub.f32 0.0, %v699_v52  ;;  %v688_v59 = vsub.f32 0.0, %v687_v53 }
 0x30e   : > { %v673_v51 = vpop.permute.xlu1 %672 }
 0x312   : > { %v676_v57 = vpop.permute.xlu1 %675 }
 0x313   : > { %v679_v60 = vsel %vm678_vm5, %v673_v51, %v676_v57  ;;  %v698_v61 = vsel %vm678_vm5, %v676_v57, %v673_v51 }
 0x314   : > { %v701_v63 = vsel %vm669_vm7, %v700_v56, %v698_v61  ;;  %v689_v0 = vsel %vm669_vm7, %v688_v59, %v679_v60 }
 0x315   : > { %v702_v1 = vmul.f32 %v701_v63, %v654_v62  ;;  %v690_v5 = vmul.f32 %v689_v0, %v654_v62 }
 0x316   : > { %v633_v2 = vpop.permute.xlu1 %632 }
 0x317   : > { %704 = vrot.lane.b32.xlu0 %v702_v1, %s2197_s4  ;;  %v640_v4 = vsel %vm639_vm6, %v638_v3, %v633_v2 }
 0x318   : > { %694 = vrot.lane.b32.xlu1 %v640_v4, %s2197_s4  ;;  %v670_v6 = vmul.f32 %v640_v4, %v1959_v36 }
 0x31a   : > { %v691_v7 = vadd.f32 %v690_v5, %v670_v6 }
 0x31b   : > { %737 = vrot.lane.b32.xlu0 %v1965_v40, %s1616_s2 }
 0x31c   : > { %v692_v8 = vmul.f32 0.25, %v691_v7 }
 0x31e   : > { %v708_v9 = vpack.c.bf16 %v692_v8, %v692_v8 }
 0x31f   : > { %752 = vrot.lane.b32.xlu0 %v1965_v40, %s1617_s5 }
 0x320   : > { %724 = vrot.lane.b32.xlu1 %v708_v9, %s1616_s2  ;;  %710 = vst.msk [vmem:[%s1991_s23] sm:$0xf] %vm709_vm1, %v708_v9 }
 0x324   : > { %742 = vrot.lane.b32.xlu1 %v708_v9, %s1617_s5  ;;  %s831_s5 = sshll.u32 %s1968_s28, 4  ;;  %s2066_s5 = int_to_ptr.vmem [resolvable:$true] %s831_s5 }
 0x389   : > { %v705_v10 = vpop.permute.xlu0 %704 }
 0x38a   : > { %v695_v11 = vpop.permute.xlu1 %694 }
 0x38b   : > { %v697_v12 = vmul.f32 %v695_v11, %v1959_v36 }
 0x38d   : > { %v707_v13 = vadd.f32 %v705_v10, %v697_v12  ;;  %v738_v14 = vpop.permute.xlu0 %737 }
 0x38e   : > { %1084 = vst.msk [vmem:[%s1968_s28 + $0x4] sm:$0xf] %vm709_vm1, %v738_v14 }
 0x38f   : > { %v1102_v15 = vpack.c.bf16 %v707_v13, %v707_v13 }
 0x391   : > { %729 = vrot.lane.b32.xlu0 %v1102_v15, %s1609_s12  ;;  %v753_v16 = vpop.permute.xlu0 %752  ;;  %715 = vrot.lane.b32.xlu1 %v1102_v15, %s2197_s4  ;;  %s1094_s12 = sshll.u32 %s2247_s24, 3  ;;  %s2032_s24 = scalar_lea.sflag [#allocation13], %s418_s25 }
 0x392   : > { %1087 = vst.msk [vmem:[%s1968_s28 + $0x8] sm:$0xf] %vm709_vm1, %v753_v16  ;;  %v725_v17 = vpop.permute.xlu1 %724  ;;  %s794_s1 = sadd.s32 %s2248_s22, %s1094_s12  ;;  %s1414_s22 = scalar_lea.vmem %s2015_s27, 256 }
 0x393   : > { %1081 = vst.msk [vmem:[%s1991_s23 + $0x4] sm:$0xf] %vm709_vm1, %v725_v17  ;;  %s2012_s21 = sshll.u32 %s794_s1, 6  ;;  %p1415_p4 = scmp.ne.s32.totalorder %s2015_s27, %s1414_s22 }
 0x394   : > { %s2023_s2 = scalar_lea.hbm %s2250_s11, %s2012_s21 }
 0x395   : > { %762 = vrot.lane.b32.xlu0 %v1102_v15, %s1608_s15  ;;  %747 = vrot.lane.b32.xlu1 %v1102_v15, %s1610_s26  ;;  %s797_s15 = sshll.u32 %s1991_s23, 4  ;;  %p1416_p6 = pnand %p1415_p4, %p1859_p7  ;;  %s2026_s15 = int_to_ptr.vmem [resolvable:$true] %s797_s15 }
 0x396   : > { %v743_v18 = vpop.permute.xlu1 %742 }
 0x397   : > { %1085 = vst.msk [vmem:[%s1991_s23 + $0x8] sm:$0xf] %vm709_vm1, %v743_v18  ;;  %p1417_p0 = pneg %p1416_p6 }
 0x399   : > { %767 = vrot.lane.b32.xlu0 %v1965_v40, %s1618_s9  ;;  %757 = vrot.lane.b32.xlu1 %v708_v9, %s1618_s9  ;;  %s1619_s9 = smov [#allocation12]  }
 0x39a   : > { %s1418_s12 = sshll.u32 %s1619_s9, 4  ;;  %s1419_s12 = int_to_ptr.vmem [resolvable:$false] %s1418_s12 }
 0x39b   : > { %s1420_s1 = scalar_lea.vmem %s1419_s12, 512  ;;  %p1421_p2 = scmp.lt.s32.totalorder %s2015_s27, %s1419_s12 }
 0x39c   : > { %p1422_p13 = scmp.lt.s32.totalorder %s1420_s1, %s1414_s22 }
 0x39e   : > { %p1423_p9 = por %p1422_p13, %p1421_p2 }
 0x3a0   : > { %p1424_p5 = pnand %p1423_p9, %p1417_p0 }
 0x403   : > { %v730_v19 = vpop.permute.xlu0 %729  ;;  %v716_v20 = vpop.permute.xlu1 %715 }
 0x404   : > { %1082 = vst.msk [vmem:[%s478_s16 + $0x4] sm:$0xf] %vm709_vm1, %v730_v19  ;;  %718 = vst.msk [vmem:[%s478_s16] sm:$0xf] %vm709_vm1, %v716_v20 }
 0x407   : > { %v763_v21 = vpop.permute.xlu0 %762  ;;  %v748_v22 = vpop.permute.xlu1 %747 }
 0x408   : > { %1089 = vst.msk [vmem:[%s478_s16 + $0xc] sm:$0xf] %vm709_vm1, %v763_v21  ;;  %1086 = vst.msk [vmem:[%s478_s16 + $0x8] sm:$0xf] %vm709_vm1, %v748_v22 }
 0x409   : > { %1427 = shalt.err (!%p1424_p5)
}
 0x40a   : > { %s1428_s20 = scalar_lea.hbm %s2023_s2, 256  ;;  %s1432_s26 = scalar_lea.hbm %s2251_s7, 1024 }
 0x40b   : > { %p1429_p8 = scmp.ne.s32.totalorder %s2023_s2, %s1428_s20  ;;  %p1433_p12 = scmp.lt.s32.totalorder %s2023_s2, %s2251_s7 }
 0x40c   : > { %p1434_p1 = scmp.lt.s32.totalorder %s1432_s26, %s1428_s20 }
 0x40d   : > { %p1430_p3 = pnand %p1429_p8, %p1859_p7 }
 0x40e   : > { %p1435_p4 = por %p1434_p1, %p1433_p12 }
 0x40f   : > { %p1431_p10 = pneg %p1430_p3 }
 0x411   : > { %p1436_p6 = pnand %p1435_p4, %p1431_p10 }
 0x413   : > { %1439 = shalt.err (!%p1436_p6)
}
 0x414   : > { %s1620_s22 = smov 128   ;;  %s1621_s9 = smov 4   ;;  %v768_v23 = vpop.permute.xlu0 %767  ;;  %v758_v24 = vpop.permute.xlu1 %757 }
 0x415   : > { %1120 = dma.vmem_to_hbm [thread:$0]  (%p1859_p7), %s2015_s27, 256, %s2023_s2, %s2032_s24, %s2197_s4, %s1620_s22, %s1621_s9  }
 0x416   : > { %s2252_s20 = sld [smem:[#allocation35_spill]]  ;;  %1090 = vst.msk [vmem:[%s1968_s28 + $0xc] sm:$0xf] %vm709_vm1, %v768_v23  ;;  %1088 = vst.msk [vmem:[%s1991_s23 + $0xc] sm:$0xf] %vm709_vm1, %v758_v24  ;;  %s773_s27 = scalar_lea.sflag [#allocation4], %s1915_s10 }
 0x417   : > { %s2253_s29 = sld [smem:[#allocation37_spill]]  ;;  %s1440_s2 = scalar_lea.vmem %s2026_s15, 256 }
 0x418   : > { %p1441_p0 = scmp.ne.s32.totalorder %s2026_s15, %s1440_s2  ;;  %s1622_s12 = smov [#allocation11]  }
 0x419   : > { %s1444_s1 = sshll.u32 %s1622_s12, 4  ;;  %s1445_s1 = int_to_ptr.vmem [resolvable:$false] %s1444_s1 }
 0x41a   : > { %p1442_p2 = pnand %p1441_p0, %p1859_p7  ;;  %s1446_s4 = scalar_lea.vmem %s1445_s1, 512 }
 0x41b   : > { %p1447_p9 = scmp.lt.s32.totalorder %s2026_s15, %s1445_s1  ;;  %p1448_p5 = scmp.lt.s32.totalorder %s1446_s4, %s1440_s2 }
 0x41c   : > { %s2062_s25 = scalar_lea.hbm %s2252_s20, %s2012_s21  ;;  %p1443_p13 = pneg %p1442_p2 }
 0x41d   : > { %s2072_s11 = scalar_lea.hbm %s2253_s29, %s2012_s21  ;;  %p1449_p8 = por %p1448_p5, %p1447_p9 }
 0x41f   : > { %p1450_p3 = pnand %p1449_p8, %p1443_p13 }
 0x421   : > { %1453 = shalt.err (!%p1450_p3)
}
 0x422   : > { %s1454_s28 = scalar_lea.hbm %s2062_s25, 256  ;;  %s1458_s21 = scalar_lea.hbm %s2252_s20, 1024 }
 0x423   : > { %p1455_p10 = scmp.ne.s32.totalorder %s2062_s25, %s1454_s28  ;;  %p1459_p4 = scmp.lt.s32.totalorder %s2062_s25, %s2252_s20 }
 0x424   : > { %p1460_p6 = scmp.lt.s32.totalorder %s1458_s21, %s1454_s28 }
 0x425   : > { %p1456_p12 = pnand %p1455_p10, %p1859_p7 }
 0x426   : > { %p1461_p0 = por %p1460_p6, %p1459_p4 }
 0x427   : > { %p1457_p1 = pneg %p1456_p12 }
 0x429   : > { %p1462_p2 = pnand %p1461_p0, %p1457_p1 }
 0x42b   : > { %1465 = shalt.err (!%p1462_p2)
}
 0x42c   : > { %s2254_s4 = smov 64   ;;  %s1466_s2 = scalar_lea.vmem %s2066_s5, 256 }
 0x42d   : > { %1119 = dma.vmem_to_hbm [thread:$0]  (%p1859_p7), %s2026_s15, 256, %s2062_s25, %s773_s27, %s2254_s4, %s1620_s22, %s1621_s9  }
 0x42e   : > { %p1467_p13 = scmp.ne.s32.totalorder %s2066_s5, %s1466_s2  ;;  %s1623_s12 = smov [#allocation14]  }
 0x42f   : > { %s1470_s1 = sshll.u32 %s1623_s12, 4  ;;  %s1471_s1 = int_to_ptr.vmem [resolvable:$false] %s1470_s1 }
 0x430   : > { %p1468_p9 = pnand %p1467_p13, %p1859_p7  ;;  %s1472_s28 = scalar_lea.vmem %s1471_s1, 512 }
 0x431   : > { %p1473_p8 = scmp.lt.s32.totalorder %s2066_s5, %s1471_s1  ;;  %p1474_p3 = scmp.lt.s32.totalorder %s1472_s28, %s1466_s2 }
 0x432   : > { %p1469_p5 = pneg %p1468_p9 }
 0x433   : > { %p1475_p10 = por %p1474_p3, %p1473_p8 }
 0x435   : > { %p1476_p12 = pnand %p1475_p10, %p1469_p5 }
 0x437   : > { %1479 = shalt.err (!%p1476_p12)
}
 0x438   : > { %s1480_s10 = scalar_lea.hbm %s2072_s11, 256  ;;  %s1484_s27 = scalar_lea.hbm %s2253_s29, 1024 }
 0x439   : > { %p1481_p1 = scmp.ne.s32.totalorder %s2072_s11, %s1480_s10  ;;  %p1485_p0 = scmp.lt.s32.totalorder %s2072_s11, %s2253_s29 }
 0x43a   : > { %p1486_p2 = scmp.lt.s32.totalorder %s1484_s27, %s1480_s10 }
 0x43b   : > { %p1482_p4 = pnand %p1481_p1, %p1859_p7 }
 0x43c   : > { %p1487_p13 = por %p1486_p2, %p1485_p0 }
 0x43d   : > { %p1483_p6 = pneg %p1482_p4 }
 0x43f   : > { %p1488_p9 = pnand %p1487_p13, %p1483_p6 }
 0x441   : > { %1491 = shalt.err (!%p1488_p9)
}
 0x442   : > { %1121 = dma.vmem_to_hbm [thread:$0]  (%p1859_p7), %s2066_s5, 256, %s2072_s11, %s2032_s24, %s2254_s4, %s1620_s22, %s1621_s9  }
 0x443 PF: > { %s2255_s16 = sld [smem:[#allocation22_spill]]  ;;  %p1157_p5 = scmp.ge.s32.totalorder %s1598_s19, 2 }
 0x445   : > { %p1143_p8 = pnand %p1157_p5, %p1863_p11 }
 0x447   : > { %p1144_p3 = pneg %p1143_p8 }
 0x449   : > { %s846_s26 = sand.u32 1, %s2255_s16  }
 0x44a   : > { %s847_s2 = scalar_lea.sflag [#allocation4], %s846_s26 }
 0x44b   : > { %1549 = dma.done.wait (%p1144_p3), %s847_s2, 256  }
 0x44c   : > { %1551 = vsyncadd (%p1144_p3), %s847_s2, 4294967040  ;;  %s2256_s8 = sadd.s32 4294967294, %s1598_s19  }
 0x44d   : > { %s855_s12 = sand.u32 1, %s2256_s8  }
 0x44e   : > { %s856_s1 = scalar_lea.sflag [#allocation13], %s855_s12 }
 0x44f   : > { %1553 = dma.done.wait (%p1144_p3), %s856_s1, 512  }
 0x450   : > { %1555 = vsyncadd (%p1144_p3), %s856_s1, 4294966784  ;;  %s33_s19 = sadd.s32 1, %s1598_s19   ;;  %s2257_s30 = sld [smem:[#allocation20_spill]] }
 0x451   : > { %p30_p7 = scmp.ge.s32.totalorder %s33_s19, 6   ;;  %s2258_s10 = sld [smem:[#allocation21_spill]] }
 0x452   : > { %s2259_s11 = sld [smem:[#allocation27_spill]]  ;;  %s2262_s12 = smov %s1574_s13 }
 0x453   : > { %s2260_s5 = sld [smem:[#allocation25_spill]]  ;;  %s2263_s13 = smov %s1578_s14 }
 0x454   : > { %s2261_s24 = sld [smem:[#allocation28_spill]]  ;;  %s2264_s14 = smov %s1873_s3 }
 0x455   : > { %s2265_s15 = smov %s1590_s17  ;;  %s2266_s16 = smov %s1594_s18 }
 0x456   :  { %32 = sbr.rel (!%p30_p7) target bundleno = 23 (0x17), region = 166 }
 0x459   : > { %s2267_s17 = smov %s2260_s5 }
 0x45a   : > { %s2268_s18 = smov %s2261_s24 }
 0x45b   :  { %870 = vsyncpa [#allocation3], 1 }
 0x45c   :  { %872 = vsyncpa [#allocation3 + $0x1], 1 }
 0x45d   :  { %873 = vsyncpa [#allocation6], 1 }
 0x45e   :  { %874 = vsyncpa [#allocation9], 1 }
 0x45f   :  { %876 = vsyncpa [#allocation9 + $0x1], 1 }
 0x460   :  { %877 = vsyncpa [#allocation4], 1 }
 0x461   :  { %879 = vsyncpa [#allocation4 + $0x1], 1 }
 0x462   :  { %880 = vsyncpa [#allocation13], 1 }
 0x463   :  { %882 = vsyncpa [#allocation13 + $0x1], 1 }

</bundles_post_ra>
